<compile_context>
chip_gen: v7x
topology: tpu7x:2x2x1
jax: 0.10.0
libtpu: 0.0.40
codegen_flags: <defaults>
</compile_context>

<pallas_src>
import jax
import jax.numpy as jnp
from jax.experimental import pallas as pl
from jax.experimental.pallas import tpu as pltpu


def _round_up(x, m):
    return ((x + m - 1) // m) * m


def _mlp_kernel(x_ref, w1_ref, b1_ref, w2_ref, b2_ref, w3_ref, b3_ref, o_ref):
    """relu(x@W1 + b1) -> relu(. @ W2 + b2) -> lane reduce with w3 + b3."""
    # fc1: single K=128 bf16 MXU matmul, f32 accumulation; bias/ReLU in f32.
    h1 = jnp.dot(x_ref[...], w1_ref[...], preferred_element_type=jnp.float32)
    h1 = jnp.maximum(h1 + b1_ref[...], 0.0)                     # (TB, 128) f32

    # fc2: bf16 operands into the MXU, f32 accumulation.
    h2 = jnp.dot(h1.astype(jnp.bfloat16), w2_ref[...],
                 preferred_element_type=jnp.float32)
    h2 = jnp.maximum(h2 + b2_ref[...], 0.0)                     # (TB, 64) f32

    # fc3: N=1 output -> VPU multiply + cross-lane reduce (keepdims) instead of
    # a wasteful 64x1 MXU matmul; (TB, 1) store avoids an XLU relayout.
    w3 = w3_ref[...].astype(jnp.float32)                        # (1, 64)
    o_ref[...] = jnp.sum(h2 * w3, axis=-1, keepdims=True) + b3_ref[0]


def deep_recommender_forward(user, movie, kp, *, max_tile=4096):
    """Mirrors DeepRecommender.forward(user, movie) using kernel-ready params."""
    ue_tab = kp["user_embed"]        # (num_users,  Epad) bf16
    me_tab = kp["movie_embed"]       # (num_movies, Epad) bf16
    Epad = ue_tab.shape[1]           # 64
    Din = kp["w1"].shape[0]          # 128 (= 2 * Epad)
    H1 = kp["w1"].shape[1]           # 128
    H2 = kp["w2"].shape[1]           # 64

    B = user.shape[0]
    # Batch tile: as large as reasonable (amortize ~0.35 us/step pipeline
    # overhead) but capped so the grid keeps >= 2 blocks for v7x's 2 TCs.
    B128 = _round_up(B, 128)
    TB = min(max_tile, max(128, _round_up((B128 + 1) // 2, 128)))
    Bp = _round_up(B, TB)
    n_blocks = Bp // TB

    user_p = jnp.pad(user.astype(jnp.int32), (0, Bp - B))
    movie_p = jnp.pad(movie.astype(jnp.int32), (0, Bp - B))

    # Gather both embedding halves directly into the fused (Bp, Din) bf16
    # activation the kernel consumes (columns [0:Epad] = user, [Epad:] = movie).
    ue = jnp.take(ue_tab, user_p, axis=0)                # (Bp, Epad) bf16
    me = jnp.take(me_tab, movie_p, axis=0)               # (Bp, Epad) bf16
    x = jnp.concatenate([ue, me], axis=1)                # (Bp, Din)  bf16

    flops = 2 * Bp * (Din * H1 + H1 * H2 + H2)
    bytes_accessed = (Bp * Din * 2                        # activation (bf16)
                      + (Din * H1 + H1 * H2 + H2) * 2     # weights (bf16)
                      + (H1 + H2 + 1) * 4                 # biases (f32)
                      + Bp * 4)                           # output (f32)

    out = pl.pallas_call(
        _mlp_kernel,
        out_shape=jax.ShapeDtypeStruct((Bp, 1), jnp.float32),
        grid=(n_blocks,),
        in_specs=[
            pl.BlockSpec((TB, Din), lambda i: (i, 0)),    # fused embedding tile
            pl.BlockSpec((Din, H1), lambda i: (0, 0)),    # W1 (resident)
            pl.BlockSpec((1, H1), lambda i: (0, 0)),      # b1
            pl.BlockSpec((H1, H2), lambda i: (0, 0)),     # W2
            pl.BlockSpec((1, H2), lambda i: (0, 0)),      # b2
            pl.BlockSpec((1, H2), lambda i: (0, 0)),      # w3 as a row vector
            pl.BlockSpec(memory_space=pltpu.MemorySpace.SMEM),  # b3 scalar
        ],
        out_specs=pl.BlockSpec((TB, 1), lambda i: (i, 0)),
        compiler_params=pltpu.CompilerParams(
            dimension_semantics=("parallel",),
            vmem_limit_bytes=32 * 1024 * 1024),
        cost_estimate=pl.CostEstimate(
            flops=flops, transcendentals=0, bytes_accessed=bytes_accessed),
    )(x, kp["w1"], kp["b1"], kp["w2"], kp["b2"], kp["w3"], kp["b3"])

    # x.squeeze() in the torch module: (B, 1) -> (B,); drop batch padding.
    return out[:B, 0]


def init_params(key, num_users, num_movies, embed_size=50):
    """Deterministic f32 params matching the torch module's shapes."""
    ks = jax.random.split(key, 8)
    d_in = embed_size * 2

    def linear(kw, kb, fan_in, fan_out):
        bound = 1.0 / jnp.sqrt(fan_in)
        # stored as (in, out) = transpose of torch nn.Linear weight
        w = jax.random.uniform(kw, (fan_in, fan_out), jnp.float32, -bound, bound)
        b = jax.random.uniform(kb, (1, fan_out), jnp.float32, -bound, bound)
        return w, b

    w1, b1 = linear(ks[2], ks[3], d_in, 128)
    w2, b2 = linear(ks[4], ks[5], 128, 64)
    w3, b3 = linear(ks[6], ks[7], 64, 1)

    return {
        "user_embed": jax.random.normal(ks[0], (num_users, embed_size), jnp.float32),
        "movie_embed": jax.random.normal(ks[1], (num_movies, embed_size), jnp.float32),
        "w1": w1, "b1": b1,
        "w2": w2, "b2": b2,
        "w3": w3, "b3": b3,
    }


def prepare_params(params):
    """One-time conversion to kernel layout: bf16, E padded to 64, W1 merged.

    The fused activation layout is [user_emb(E) | pad | movie_emb(E) | pad],
    so W1's rows are rearranged to [W1_user(E) | pad | W1_movie(E) | pad].
    """
    E = params["user_embed"].shape[1]
    Epad = _round_up(E, 64)
    pad_e = Epad - E

    def pad_cols(a):
        return jnp.pad(a, ((0, 0), (0, pad_e))).astype(jnp.bfloat16)

    w1 = params["w1"]                                     # (2E, 128)
    w1u = jnp.pad(w1[:E], ((0, pad_e), (0, 0)))           # (Epad, 128)
    w1m = jnp.pad(w1[E:], ((0, pad_e), (0, 0)))           # (Epad, 128)
    w1_merged = jnp.concatenate([w1u, w1m], axis=0).astype(jnp.bfloat16)

    return {
        "user_embed": pad_cols(params["user_embed"]),     # (num_users, Epad) bf16
        "movie_embed": pad_cols(params["movie_embed"]),   # (num_movies, Epad) bf16
        "w1": w1_merged,                                  # (2*Epad, 128) bf16
        "b1": params["b1"].astype(jnp.float32),           # (1, 128) f32
        "w2": params["w2"].astype(jnp.bfloat16),          # (128, 64) bf16
        "b2": params["b2"].astype(jnp.float32),           # (1, 64) f32
        "w3": params["w3"].T.astype(jnp.bfloat16),        # (1, 64) bf16 row
        "b3": params["b3"].reshape(-1).astype(jnp.float32),  # (1,) f32, SMEM
    }


def _reference_forward(user, movie, params):
    """Pure-JAX f32 reference matching the torch module."""
    ue = jnp.take(params["user_embed"], user, axis=0)
    me = jnp.take(params["movie_embed"], movie, axis=0)
    x = jnp.concatenate([ue, me], axis=1)
    x = jnp.maximum(x @ params["w1"] + params["b1"], 0.0)
    x = jnp.maximum(x @ params["w2"] + params["b2"], 0.0)
    x = x @ params["w3"] + params["b3"]
    return jnp.squeeze(x, axis=-1)


if __name__ == "__main__":
    key = jax.random.PRNGKey(0)
    num_users, num_movies, embed_size = 32, 48, 50
    batch = 8

    pkey, ukey, mkey = jax.random.split(key, 3)
    params = init_params(pkey, num_users, num_movies, embed_size)
    kparams = prepare_params(params)
    user = jax.random.randint(ukey, (batch,), 0, num_users, dtype=jnp.int32)
    movie = jax.random.randint(mkey, (batch,), 0, num_movies, dtype=jnp.int32)

    fwd = jax.jit(deep_recommender_forward)
    out = fwd(user, movie, kparams)
    out = jax.block_until_ready(out)

    ref = _reference_forward(user, movie, params)
    assert out.shape == (batch,)
    # bf16 weights/activations inside the kernel -> loosened tolerance vs f32 ref.
    assert jnp.allclose(out, ref, atol=5e-2, rtol=5e-2), "mismatch vs reference"

    print("KERNEL_OK")
</pallas_src>

<mosaic_0001>
module attributes {stable_mosaic.version = 11 : i64} {
  func.func @_mlp_kernel(%arg0: i32, %arg1: memref<128x128xbf16, #tpu.memory_space<vmem>>, %arg2: memref<128x128xbf16, #tpu.memory_space<vmem>>, %arg3: memref<1x128xf32, #tpu.memory_space<vmem>>, %arg4: memref<128x64xbf16, #tpu.memory_space<vmem>>, %arg5: memref<1x64xf32, #tpu.memory_space<vmem>>, %arg6: memref<1x64xbf16, #tpu.memory_space<vmem>>, %arg7: memref<1xf32, #tpu.memory_space<smem>>, %arg8: memref<128x1xf32, #tpu.memory_space<vmem>>) attributes {dimension_semantics = [#tpu.dimension_semantics<parallel>], iteration_bounds = array<i64: 1>, scalar_prefetch = 0 : i64, scratch_operands = 0 : i64, tpu.core_type = #tpu.core_type<tc>, window_params = [{transform_indices = @transform_0, window_bounds = array<i64: 128, 128>}, {pipeline_mode = #tpu.pipeline_mode<synchronous>, transform_indices = @transform_1, window_bounds = array<i64: 128, 128>}, {pipeline_mode = #tpu.pipeline_mode<synchronous>, transform_indices = @transform_2, window_bounds = array<i64: 1, 128>}, {pipeline_mode = #tpu.pipeline_mode<synchronous>, transform_indices = @transform_3, window_bounds = array<i64: 128, 64>}, {pipeline_mode = #tpu.pipeline_mode<synchronous>, transform_indices = @transform_4, window_bounds = array<i64: 1, 64>}, {pipeline_mode = #tpu.pipeline_mode<synchronous>, transform_indices = @transform_5, window_bounds = array<i64: 1, 64>}, {transform_indices = @transform_6, window_bounds = array<i64: 1>}, {transform_indices = @transform_7, window_bounds = array<i64: 128, 1>}]} {
    %c0 = arith.constant 0 : index
    %c0_0 = arith.constant 0 : index
    %0 = vector.load %arg1[%c0, %c0_0] : memref<128x128xbf16, #tpu.memory_space<vmem>>, vector<128x128xbf16>
    %c0_1 = arith.constant 0 : index
    %c0_2 = arith.constant 0 : index
    %1 = vector.load %arg2[%c0_1, %c0_2] : memref<128x128xbf16, #tpu.memory_space<vmem>>, vector<128x128xbf16>
    %cst = arith.constant dense<0.000000e+00> : vector<128x128xf32>
    %2 = tpu.matmul %0, %1, %cst {dimension_numbers = #tpu.dot_dimension_numbers<[1], [0], [0], [1], [0, 0, 1, 1], [], []>} : vector<128x128xbf16>, vector<128x128xbf16>, vector<128x128xf32> -> vector<128x128xf32>
    %c0_3 = arith.constant 0 : index
    %c0_4 = arith.constant 0 : index
    %3 = vector.load %arg3[%c0_3, %c0_4] : memref<1x128xf32, #tpu.memory_space<vmem>>, vector<1x128xf32>
    %4 = vector.broadcast %3 : vector<1x128xf32> to vector<128x128xf32>
    %5 = arith.addf %2, %4 : vector<128x128xf32>
    %cst_5 = arith.constant 0.000000e+00 : f32
    %6 = vector.broadcast %cst_5 : f32 to vector<128x128xf32>
    %7 = arith.maximumf %5, %6 : vector<128x128xf32>
    %8 = arith.truncf %7 : vector<128x128xf32> to vector<128x128xbf16>
    %c0_6 = arith.constant 0 : index
    %c0_7 = arith.constant 0 : index
    %9 = vector.load %arg4[%c0_6, %c0_7] : memref<128x64xbf16, #tpu.memory_space<vmem>>, vector<128x64xbf16>
    %cst_8 = arith.constant dense<0.000000e+00> : vector<128x64xf32>
    %10 = tpu.matmul %8, %9, %cst_8 {dimension_numbers = #tpu.dot_dimension_numbers<[1], [0], [0], [1], [0, 0, 1, 1], [], []>} : vector<128x128xbf16>, vector<128x64xbf16>, vector<128x64xf32> -> vector<128x64xf32>
    %c0_9 = arith.constant 0 : index
    %c0_10 = arith.constant 0 : index
    %11 = vector.load %arg5[%c0_9, %c0_10] : memref<1x64xf32, #tpu.memory_space<vmem>>, vector<1x64xf32>
    %12 = vector.broadcast %11 : vector<1x64xf32> to vector<128x64xf32>
    %13 = arith.addf %10, %12 : vector<128x64xf32>
    %cst_11 = arith.constant 0.000000e+00 : f32
    %14 = vector.broadcast %cst_11 : f32 to vector<128x64xf32>
    %15 = arith.maximumf %13, %14 : vector<128x64xf32>
    %c0_12 = arith.constant 0 : index
    %c0_13 = arith.constant 0 : index
    %16 = vector.load %arg6[%c0_12, %c0_13] : memref<1x64xbf16, #tpu.memory_space<vmem>>, vector<1x64xbf16>
    %17 = arith.extf %16 : vector<1x64xbf16> to vector<1x64xf32>
    %18 = vector.broadcast %17 : vector<1x64xf32> to vector<128x64xf32>
    %19 = arith.mulf %15, %18 : vector<128x64xf32>
    %cst_14 = arith.constant dense<0.000000e+00> : vector<128xf32>
    %20 = vector.multi_reduction <add>, %19, %cst_14 [1] : vector<128x64xf32> to vector<128xf32>
    %21 = vector.shape_cast %20 : vector<128xf32> to vector<128x1xf32>
    %c0_15 = arith.constant 0 : index
    %22 = memref.load %arg7[%c0_15] : memref<1xf32, #tpu.memory_space<smem>>
    %23 = vector.broadcast %22 : f32 to vector<128x1xf32>
    %24 = arith.addf %21, %23 : vector<128x1xf32>
    %c0_16 = arith.constant 0 : index
    %c0_17 = arith.constant 0 : index
    %25 = vector.load %arg8[%c0_16, %c0_17] : memref<128x1xf32, #tpu.memory_space<vmem>>, vector<128x1xf32>
    tpu.vector_store %arg8[%c0_16, %c0_17], %24 {strides = array<i32>} : memref<128x1xf32, #tpu.memory_space<vmem>>, vector<128x1xf32>,
    return
  }
  func.func @transform_0(%arg0: i32) -> (i32, i32) {
    %c0_i32 = arith.constant 0 : i32
    %c0_i32_0 = arith.constant 0 : i32
    return %arg0, %c0_i32 : i32, i32
  }
  func.func @transform_1(%arg0: i32) -> (i32, i32) {
    %c0_i32 = arith.constant 0 : i32
    %c0_i32_0 = arith.constant 0 : i32
    %c0_i32_1 = arith.constant 0 : i32
    return %c0_i32, %c0_i32_0 : i32, i32
  }
  func.func @transform_2(%arg0: i32) -> (i32, i32) {
    %c0_i32 = arith.constant 0 : i32
    %c0_i32_0 = arith.constant 0 : i32
    %c0_i32_1 = arith.constant 0 : i32
    return %c0_i32, %c0_i32_0 : i32, i32
  }
  func.func @transform_3(%arg0: i32) -> (i32, i32) {
    %c0_i32 = arith.constant 0 : i32
    %c0_i32_0 = arith.constant 0 : i32
    %c0_i32_1 = arith.constant 0 : i32
    return %c0_i32, %c0_i32_0 : i32, i32
  }
  func.func @transform_4(%arg0: i32) -> (i32, i32) {
    %c0_i32 = arith.constant 0 : i32
    %c0_i32_0 = arith.constant 0 : i32
    %c0_i32_1 = arith.constant 0 : i32
    return %c0_i32, %c0_i32_0 : i32, i32
  }
  func.func @transform_5(%arg0: i32) -> (i32, i32) {
    %c0_i32 = arith.constant 0 : i32
    %c0_i32_0 = arith.constant 0 : i32
    %c0_i32_1 = arith.constant 0 : i32
    return %c0_i32, %c0_i32_0 : i32, i32
  }
  func.func @transform_6(%arg0: i32) -> i32 {
    %c0_i32 = arith.constant 0 : i32
    %c0_i32_0 = arith.constant 0 : i32
    return %c0_i32 : i32
  }
  func.func @transform_7(%arg0: i32) -> (i32, i32) {
    %c0_i32 = arith.constant 0 : i32
    %c0_i32_0 = arith.constant 0 : i32
    return %arg0, %c0_i32 : i32, i32
  }
}

</mosaic_0001>

<bundles_post_ra>
// kernel: deep_recommender_forward.1
= control target key start
LH: loop header
LB: loop body
LE: loop exit
PB: predicated region body
PF: predicated region fallthrough
CT: control target
= control target key end

     0   :  { %vm490_vm0 = vcmask 523264   ;;  %vm557_vm1 = vcmask 7168   ;;  %s964_s1 = inlined_call_operand.vmem [shape: bf16[128,128], index: 1, kind: input, shape index: {}]   ;;  %s965_s0 = inlined_call_operand.vmem [shape: bf16[128,128], index: 0, kind: input, shape index: {}]   ;;  %s966_s3 = inlined_call_operand.vmem [shape: bf16[128,64], index: 3, kind: input, shape index: {}]   ;;  %s967_s2 = inlined_call_operand.vmem [shape: f32[1,128], index: 2, kind: input, shape index: {}]   ;;  %s968_s5 = inlined_call_operand.vmem [shape: bf16[1,64], index: 5, kind: input, shape index: {}]   ;;  %s969_s4 = inlined_call_operand.vmem [shape: f32[1,64], index: 4, kind: input, shape index: {}]   ;;  %s970_s6 = inlined_call_operand.<no memory space> [shape: f32[1], index: 6, kind: input, shape index: {}]   ;;  %s971_s7 = inlined_call_operand.vmem [shape: f32[128,1], index: 7, kind: output, shape index: {}]  }
   0x1   :  { %v700_v0 = vld [vmem:[%s964_s1] sm:$0xff]   ;;  %v701_v1 = vld [vmem:[%s964_s1 + $0x8] sm:$0xff]   ;;  %v702_v2 = vld [vmem:[%s964_s1 + $0x10] sm:$0xff]  }
   0x2   :  { %636 = vmatprep.subr.bf16.mxu0 %v700_v0  ;;  %v703_v3 = vld [vmem:[%s964_s1 + $0x18] sm:$0xff]   ;;  %v708_v4 = vld [vmem:[%s965_s0] sm:$0xff]   ;;  %v705_v6 = vld [vmem:[%s964_s1 + $0x28] sm:$0xff]  }
   0x3   :  { %637 = vmatpush3.bf16.msra.mxu0 %v700_v0  ;;  %652 = vmatprep.mubr.bf16.mxu0 %v708_v4  ;;  %v704_v5 = vld [vmem:[%s964_s1 + $0x20] sm:$0xff]   ;;  %v717_v8 = vld [vmem:[%s966_s3 + $0x8] sm:$0xff]   ;;  %v706_v9 = vld [vmem:[%s964_s1 + $0x30] sm:$0xff]  }
   0x4   :  { %638 = vmatprep.subr.bf16.mxu0 %v701_v1  ;;  %v716_v7 = vld [vmem:[%s966_s3] sm:$0xff]   ;;  %v718_v10 = vld [vmem:[%s966_s3 + $0x10] sm:$0xff]   ;;  %v707_v11 = vld [vmem:[%s964_s1 + $0x38] sm:$0xff]  }
   0x5   :  { %668 = vmatprep.subr.bf16.mxu1 %v716_v7  ;;  %v719_v12 = vld [vmem:[%s966_s3 + $0x18] sm:$0xff]   ;;  %v720_v13 = vld [vmem:[%s966_s3 + $0x20] sm:$0xff]   ;;  %v709_v14 = vld [vmem:[%s965_s0 + $0x8] sm:$0xff]  }
   0x6   :  { %669 = vmatpush3.bf16.msra.mxu1 %v716_v7  ;;  %v710_v15 = vld [vmem:[%s965_s0 + $0x10] sm:$0xff]   ;;  %v721_v16 = vld [vmem:[%s966_s3 + $0x28] sm:$0xff]   ;;  %v711_v17 = vld [vmem:[%s965_s0 + $0x18] sm:$0xff]  }
   0x7   :  { %639 = vmatpush3.bf16.msra.mxu0 %v701_v1  ;;  %670 = vmatprep.subr.bf16.mxu1 %v717_v8  ;;  %v712_v18 = vld [vmem:[%s965_s0 + $0x20] sm:$0xff]   ;;  %v713_v19 = vld [vmem:[%s965_s0 + $0x28] sm:$0xff]   ;;  %v714_v20 = vld [vmem:[%s965_s0 + $0x30] sm:$0xff]  }
   0x8   :  { %640 = vmatprep.subr.bf16.mxu0 %v702_v2  ;;  %v715_v21 = vld [vmem:[%s965_s0 + $0x38] sm:$0xff]   ;;  %v722_v22 = vld [vmem:[%s966_s3 + $0x30] sm:$0xff]   ;;  %v578_v24 = vld [vmem:[%s967_s2] ss:$0 sm:$0xff] }
   0x9   :  { %v723_v23 = vld [vmem:[%s966_s3 + $0x38] sm:$0xff]  }
   0xa   :  { %671 = vmatpush3.bf16.msra.mxu1 %v717_v8 }
   0xb   :  { %641 = vmatpush3.bf16.msra.mxu0 %v702_v2  ;;  %672 = vmatprep.subr.bf16.mxu1 %v718_v10 }
   0xc   :  { %642 = vmatprep.subr.bf16.mxu0 %v703_v3 }
   0xe   :  { %673 = vmatpush3.bf16.msra.mxu1 %v718_v10 }
   0xf   :  { %643 = vmatpush3.bf16.msra.mxu0 %v703_v3  ;;  %674 = vmatprep.subr.bf16.mxu1 %v719_v12 }
  0x10   :  { %644 = vmatprep.subr.bf16.mxu0 %v704_v5 }
  0x12   :  { %675 = vmatpush3.bf16.msra.mxu1 %v719_v12 }
  0x13   :  { %645 = vmatpush3.bf16.msra.mxu0 %v704_v5  ;;  %676 = vmatprep.subr.bf16.mxu1 %v720_v13 }
  0x14   :  { %646 = vmatprep.subr.bf16.mxu0 %v705_v6 }
  0x16   :  { %677 = vmatpush3.bf16.msra.mxu1 %v720_v13 }
  0x17   :  { %647 = vmatpush3.bf16.msra.mxu0 %v705_v6  ;;  %678 = vmatprep.subr.bf16.mxu1 %v721_v16 }
  0x18   :  { %648 = vmatprep.subr.bf16.mxu0 %v706_v9 }
  0x1a   :  { %679 = vmatpush3.bf16.msra.mxu1 %v721_v16 }
  0x1b   :  { %649 = vmatpush3.bf16.msra.mxu0 %v706_v9  ;;  %680 = vmatprep.subr.bf16.mxu1 %v722_v22 }
  0x1c   :  { %650 = vmatprep.subr.bf16.mxu0 %v707_v11 }
  0x1e   :  { %681 = vmatpush3.bf16.msra.mxu1 %v722_v22  ;;  %v845_v22 = vld [vmem:[%s969_s4] ss:$0 sm:$0xff] }
  0x1f   :  { %651 = vmatpush3.bf16.msra.mxu0 %v707_v11  ;;  %682 = vmatprep.subr.bf16.mxu1 %v723_v23 }
  0x22   :  { %653 = vmatmul.mubr.bf16.vlgmr.msra.gmra.mrb[0].mxu0 %v709_v14  ;;  %683 = vmatpush3.bf16.msra.mxu1 %v723_v23 }
  0x23   :  { %656 = vmatprep.mubr.bf16.mxu0 %v710_v15 }
  0x2a   :  { %657 = vmatmul.mubr.bf16.gmra.mrb[4].mxu0 %v711_v17  ;;  %v470_v17 = vlaneseq }
  0x2b   :  { %660 = vmatprep.mubr.bf16.mxu0 %v712_v18 }
  0x2c   :  { %v471_v18 = vshrl.u32 %v470_v17, 7 }
  0x32   :  { %661 = vmatmul.mubr.bf16.gmra.mrb[8].mxu0 %v713_v19  ;;  %v468_v19 = vld [vmem:[%s968_s5] sm:$0x1] }
  0x33   :  { %664 = vmatprep.mubr.bf16.mxu0 %v714_v20  ;;  %v469_v20 = vunpack.c.l.bf16 %v468_v19 }
  0x3a   :  { %665 = vmatmul.mubr.bf16.gmra.mrb[12].mxu0 %v715_v21  ;;  %v472_v21 = vsub.s32 0, %v471_v18 }
  0xf5   :  { %v654_v25 = vpop.f32.mrb[0].mxu0 }
  0xf6   :  { %v206_v26 = vadd.f32 %v654_v25, %v578_v24  ;;  %v197_v27 = vpop.f32.mrb[1].mxu0 }
  0xf7   :  { %v198_v28 = vadd.f32 %v578_v24, %v197_v27  ;;  %v655_v29 = vpop.f32.mrb[2].mxu0 }
  0xf8   :  { %v209_v30 = vadd.f32 %v655_v29, %v578_v24  ;;  %v200_v31 = vpop.f32.mrb[3].mxu0  ;;  %v262_v33 = vmax.f32 %v206_v26, 0.0  ;;  %v848_v26 = vrot.slane %v469_v20, %v472_v21 }
  0xf9   :  { %v201_v32 = vadd.f32 %v578_v24, %v200_v31  ;;  %v260_v35 = vmax.f32 %v198_v28, 0.0 }
  0xfa   :  { %v263_v34 = vmax.f32 %v209_v30, 0.0 }
  0xfb   :  { %v261_v36 = vmax.f32 %v201_v32, 0.0 }
  0xfc   :  { %v277_v37 = vpack.c.bf16 %v263_v34, %v262_v33 }
  0xfd   :  { %v658_v38 = vpop.f32.mrb[4].mxu0  ;;  %v276_v39 = vpack.c.bf16 %v261_v36, %v260_v35 }
  0xfe   :  { %v222_v40 = vadd.f32 %v658_v38, %v578_v24  ;;  %v213_v41 = vpop.f32.mrb[5].mxu0 }
  0xff   :  { %v214_v42 = vadd.f32 %v578_v24, %v213_v41  ;;  %v659_v43 = vpop.f32.mrb[6].mxu0  ;;  %684 = vmatprep.mubr.bf16.mxu1 %v276_v39 }
 0x100   :  { %v225_v44 = vadd.f32 %v659_v43, %v578_v24  ;;  %v216_v45 = vpop.f32.mrb[7].mxu0  ;;  %685 = vmatmul.mubr.bf16.vlgmr.msra.gmra.mrb[0].mxu1 %v277_v37  ;;  %v266_v47 = vmax.f32 %v222_v40, 0.0 }
 0x101   :  { %v217_v46 = vadd.f32 %v578_v24, %v216_v45  ;;  %v264_v49 = vmax.f32 %v214_v42, 0.0 }
 0x102   :  { %v267_v48 = vmax.f32 %v225_v44, 0.0 }
 0x103   :  { %v265_v50 = vmax.f32 %v217_v46, 0.0 }
 0x104   :  { %v279_v51 = vpack.c.bf16 %v267_v48, %v266_v47 }
 0x105   :  { %v278_v52 = vpack.c.bf16 %v265_v50, %v264_v49  ;;  %v662_v53 = vpop.f32.mrb[8].mxu0 }
 0x106   :  { %v238_v54 = vadd.f32 %v662_v53, %v578_v24  ;;  %v229_v55 = vpop.f32.mrb[9].mxu0 }
 0x107   :  { %v230_v56 = vadd.f32 %v578_v24, %v229_v55  ;;  %v663_v57 = vpop.f32.mrb[10].mxu0  ;;  %688 = vmatprep.mubr.bf16.mxu1 %v278_v52 }
 0x108   :  { %v241_v58 = vadd.f32 %v663_v57, %v578_v24  ;;  %v232_v59 = vpop.f32.mrb[11].mxu0  ;;  %689 = vmatmul.mubr.bf16.gmra.mrb[4].mxu1 %v279_v51  ;;  %v270_v61 = vmax.f32 %v238_v54, 0.0 }
 0x109   :  { %v233_v60 = vadd.f32 %v578_v24, %v232_v59  ;;  %v268_v63 = vmax.f32 %v230_v56, 0.0 }
 0x10a   :  { %v271_v62 = vmax.f32 %v241_v58, 0.0 }
 0x10b   :  { %v269_v0 = vmax.f32 %v233_v60, 0.0 }
 0x10c   :  { %v281_v1 = vpack.c.bf16 %v271_v62, %v270_v61 }
 0x10d   :  { %v280_v2 = vpack.c.bf16 %v269_v0, %v268_v63  ;;  %v666_v3 = vpop.f32.mrb[12].mxu0 }
 0x10e   :  { %v254_v4 = vadd.f32 %v666_v3, %v578_v24  ;;  %v245_v5 = vpop.f32.mrb[13].mxu0 }
 0x10f   :  { %v246_v6 = vadd.f32 %v578_v24, %v245_v5  ;;  %v667_v7 = vpop.f32.mrb[14].mxu0  ;;  %692 = vmatprep.mubr.bf16.mxu1 %v280_v2 }
 0x110   :  { %v257_v8 = vadd.f32 %v667_v7, %v578_v24  ;;  %v248_v9 = vpop.f32.mrb[15].mxu0  ;;  %693 = vmatmul.mubr.bf16.gmra.mrb[8].mxu1 %v281_v1  ;;  %v274_v11 = vmax.f32 %v254_v4, 0.0 }
 0x111   :  { %v249_v10 = vadd.f32 %v578_v24, %v248_v9  ;;  %v272_v13 = vmax.f32 %v246_v6, 0.0 }
 0x112   :  { %v275_v12 = vmax.f32 %v257_v8, 0.0 }
 0x113   :  { %v273_v14 = vmax.f32 %v249_v10, 0.0 }
 0x114   :  { %v283_v15 = vpack.c.bf16 %v275_v12, %v274_v11 }
 0x115   :  { %v282_v16 = vpack.c.bf16 %v273_v14, %v272_v13 }
 0x117   :  { %696 = vmatprep.mubr.bf16.mxu1 %v282_v16 }
 0x118   :  { %697 = vmatmul.mubr.bf16.gmra.mrb[12].mxu1 %v283_v15 }
 0x1d3   :  { %v686_v23 = vpop.f32.mrb[0].mxu1 }
 0x1d4   :  { %v398_v24 = vadd.f32 %v686_v23, %v845_v22  ;;  %v389_v25 = vpop.f32.mrb[1].mxu1 }
 0x1d5   :  { %v390_v27 = vadd.f32 %v845_v22, %v389_v25  ;;  %v687_v28 = vpop.f32.mrb[2].mxu1 }
 0x1d6   :  { %v454_v29 = vmax.f32 %v398_v24, 0.0  ;;  %v401_v30 = vadd.f32 %v687_v28, %v845_v22  ;;  %v392_v31 = vpop.f32.mrb[3].mxu1 }
 0x1d7   :  { %v452_v32 = vmax.f32 %v390_v27, 0.0  ;;  %v393_v33 = vadd.f32 %v845_v22, %v392_v31 }
 0x1d8   :  { %v455_v34 = vmax.f32 %v401_v30, 0.0  ;;  %v476_v35 = vmul.f32 %v848_v26, %v454_v29 }
 0x1d9   :  { %v453_v36 = vmax.f32 %v393_v33, 0.0  ;;  %v474_v37 = vmul.f32 %v848_v26, %v452_v32 }
 0x1da   :  { %v497_v38 = vsel %vm490_vm0, %v476_v35, 0.0  ;;  %v477_v39 = vmul.f32 %v848_v26, %v455_v34 }
 0x1db   :  { %498 = vadd.xlane.f32.xlu1 %v497_v38  ;;  %v690_v40 = vpop.f32.mrb[4].mxu1  ;;  %v491_v41 = vsel %vm490_vm0, %v474_v37, 0.0  ;;  %v475_v42 = vmul.f32 %v848_v26, %v453_v36 }
 0x1dc   :  { %v414_v43 = vadd.f32 %v690_v40, %v845_v22  ;;  %v405_v44 = vpop.f32.mrb[5].mxu1  ;;  %492 = vadd.xlane.f32.xlu0 %v491_v41  ;;  %v500_v50 = vsel %vm490_vm0, %v477_v39, 0.0  ;;  %v540_v41 = vstv %s970_s6 }
 0x1dd   :  { %v406_v45 = vadd.f32 %v845_v22, %v405_v44  ;;  %v691_v46 = vpop.f32.mrb[6].mxu1  ;;  %v494_v53 = vsel %vm490_vm0, %v475_v42, 0.0 }
 0x1de   :  { %v458_v47 = vmax.f32 %v414_v43, 0.0  ;;  %v417_v48 = vadd.f32 %v691_v46, %v845_v22  ;;  %v408_v49 = vpop.f32.mrb[7].mxu1 }
 0x1df   :  { %v456_v51 = vmax.f32 %v406_v45, 0.0  ;;  %v409_v52 = vadd.f32 %v845_v22, %v408_v49  ;;  %501 = vadd.xlane.f32.xlu1 %v500_v50 }
 0x1e0   :  { %v459_v54 = vmax.f32 %v417_v48, 0.0  ;;  %495 = vadd.xlane.f32.xlu0 %v494_v53  ;;  %v480_v55 = vmul.f32 %v848_v26, %v458_v47 }
 0x1e1   :  { %v457_v56 = vmax.f32 %v409_v52, 0.0  ;;  %v478_v60 = vmul.f32 %v848_v26, %v456_v51 }
 0x1e2   :  { %v509_v57 = vsel %vm490_vm0, %v480_v55, 0.0  ;;  %v481_v58 = vmul.f32 %v848_v26, %v459_v54 }
 0x1e3   :  { %v694_v59 = vpop.f32.mrb[8].mxu1  ;;  %v479_v0 = vmul.f32 %v848_v26, %v457_v56  ;;  %v503_v8 = vsel %vm490_vm0, %v478_v60, 0.0 }
 0x1e4   :  { %v430_v61 = vadd.f32 %v694_v59, %v845_v22  ;;  %v421_v62 = vpop.f32.mrb[9].mxu1  ;;  %510 = vadd.xlane.f32.xlu0 %v509_v57  ;;  %v512_v63 = vsel %vm490_vm0, %v481_v58, 0.0 }
 0x1e5   :  { %v422_v1 = vadd.f32 %v845_v22, %v421_v62  ;;  %513 = vadd.xlane.f32.xlu1 %v512_v63  ;;  %v695_v2 = vpop.f32.mrb[10].mxu1  ;;  %v506_v10 = vsel %vm490_vm0, %v479_v0, 0.0 }
 0x1e6   :  { %v462_v3 = vmax.f32 %v430_v61, 0.0  ;;  %v433_v4 = vadd.f32 %v695_v2, %v845_v22  ;;  %v424_v5 = vpop.f32.mrb[11].mxu1 }
 0x1e7   :  { %v460_v6 = vmax.f32 %v422_v1, 0.0  ;;  %v425_v7 = vadd.f32 %v845_v22, %v424_v5 }
 0x1e8   :  { %v463_v9 = vmax.f32 %v433_v4, 0.0  ;;  %504 = vadd.xlane.f32.xlu0 %v503_v8  ;;  %v484_v11 = vmul.f32 %v848_v26, %v462_v3 }
 0x1e9   :  { %v461_v12 = vmax.f32 %v425_v7, 0.0  ;;  %507 = vadd.xlane.f32.xlu1 %v506_v10  ;;  %v482_v16 = vmul.f32 %v848_v26, %v460_v6 }
 0x1ea   :  { %v521_v13 = vsel %vm490_vm0, %v484_v11, 0.0  ;;  %v485_v14 = vmul.f32 %v848_v26, %v463_v9 }
 0x1eb   :  { %v698_v15 = vpop.f32.mrb[12].mxu1  ;;  %v483_v20 = vmul.f32 %v848_v26, %v461_v12  ;;  %v515_v30 = vsel %vm490_vm0, %v482_v16, 0.0 }
 0x1ec   :  { %v446_v17 = vadd.f32 %v698_v15, %v845_v22  ;;  %v437_v18 = vpop.f32.mrb[13].mxu1  ;;  %522 = vadd.xlane.f32.xlu0 %v521_v13  ;;  %v524_v19 = vsel %vm490_vm0, %v485_v14, 0.0 }
 0x1ed   :  { %v438_v21 = vadd.f32 %v845_v22, %v437_v18  ;;  %v699_v23 = vpop.f32.mrb[14].mxu1  ;;  %525 = vadd.xlane.f32.xlu1 %v524_v19  ;;  %v518_v31 = vsel %vm490_vm0, %v483_v20, 0.0 }
 0x1ee   :  { %v449_v24 = vadd.f32 %v699_v23, %v845_v22  ;;  %v440_v25 = vpop.f32.mrb[15].mxu1  ;;  %v466_v27 = vmax.f32 %v446_v17, 0.0 }
 0x1ef   :  { %v464_v28 = vmax.f32 %v438_v21, 0.0  ;;  %v441_v29 = vadd.f32 %v845_v22, %v440_v25 }
 0x1f0   :  { %516 = vadd.xlane.f32.xlu0 %v515_v30  ;;  %v467_v32 = vmax.f32 %v449_v24, 0.0  ;;  %v488_v37 = vmul.f32 %v848_v26, %v466_v27 }
 0x1f1   :  { %v465_v33 = vmax.f32 %v441_v29, 0.0  ;;  %519 = vadd.xlane.f32.xlu1 %v518_v31  ;;  %v486_v34 = vmul.f32 %v848_v26, %v464_v28 }
 0x1f2   :  { %v489_v22 = vmul.f32 %v848_v26, %v467_v32  ;;  %v533_v39 = vsel %vm490_vm0, %v488_v37, 0.0 }
 0x1f3   :  { %v527_v35 = vsel %vm490_vm0, %v486_v34, 0.0  ;;  %v487_v36 = vmul.f32 %v848_v26, %v465_v33 }
 0x1f4   :  { %528 = vadd.xlane.f32.xlu0 %v527_v35  ;;  %v536_v40 = vsel %vm490_vm0, %v489_v22, 0.0 }
 0x1f5   :  { %v530_v38 = vsel %vm490_vm0, %v487_v36, 0.0 }
 0x1f6   :  { %531 = vadd.xlane.f32.xlu1 %v530_v38 }
 0x1f8   :  { %534 = vadd.xlane.f32.xlu0 %v533_v39 }
 0x1fa   :  { %537 = vadd.xlane.f32.xlu1 %v536_v40 }
 0x268   :  { %v499_v42 = vpop.xlane.xlu1 %498 }
 0x269   :  { %v543_v43 = vadd.f32 %v540_v41, %v499_v42  ;;  %v493_v44 = vpop.xlane.xlu0 %492 }
 0x26a   :  { %v541_v45 = vadd.f32 %v540_v41, %v493_v44 }
 0x26b   :  { %560 = vst.msk [vmem:[%s971_s7 + $0x10] sm:$0xff] %vm557_vm1, %v543_v43 }
 0x26c   :  { %558 = vst.msk [vmem:[%s971_s7] sm:$0xff] %vm557_vm1, %v541_v45  ;;  %v502_v26 = vpop.xlane.xlu1 %501 }
 0x26d   :  { %v544_v46 = vadd.f32 %v540_v41, %v502_v26  ;;  %v496_v47 = vpop.xlane.xlu0 %495 }
 0x26e   :  { %v542_v48 = vadd.f32 %v540_v41, %v496_v47 }
 0x26f   :  { %561 = vst.msk [vmem:[%s971_s7 + $0x18] sm:$0xff] %vm557_vm1, %v544_v46 }
 0x270   :  { %559 = vst.msk [vmem:[%s971_s7 + $0x8] sm:$0xff] %vm557_vm1, %v542_v48 }
 0x271   :  { %v511_v49 = vpop.xlane.xlu0 %510 }
 0x272   :  { %v547_v50 = vadd.f32 %v540_v41, %v511_v49  ;;  %v514_v51 = vpop.xlane.xlu1 %513 }
 0x273   :  { %v548_v52 = vadd.f32 %v540_v41, %v514_v51 }
 0x274   :  { %564 = vst.msk [vmem:[%s971_s7 + $0x30] sm:$0xff] %vm557_vm1, %v547_v50 }
 0x275   :  { %565 = vst.msk [vmem:[%s971_s7 + $0x38] sm:$0xff] %vm557_vm1, %v548_v52  ;;  %v505_v53 = vpop.xlane.xlu0 %504 }
 0x276   :  { %v545_v54 = vadd.f32 %v540_v41, %v505_v53  ;;  %v508_v55 = vpop.xlane.xlu1 %507 }
 0x277   :  { %v546_v56 = vadd.f32 %v540_v41, %v508_v55 }
 0x278   :  { %562 = vst.msk [vmem:[%s971_s7 + $0x20] sm:$0xff] %vm557_vm1, %v545_v54 }
 0x279   :  { %563 = vst.msk [vmem:[%s971_s7 + $0x28] sm:$0xff] %vm557_vm1, %v546_v56  ;;  %v523_v57 = vpop.xlane.xlu0 %522 }
 0x27a   :  { %v551_v58 = vadd.f32 %v540_v41, %v523_v57  ;;  %v526_v59 = vpop.xlane.xlu1 %525 }
 0x27b   :  { %v552_v60 = vadd.f32 %v540_v41, %v526_v59 }
 0x27c   :  { %568 = vst.msk [vmem:[%s971_s7 + $0x50] sm:$0xff] %vm557_vm1, %v551_v58 }
 0x27d   :  { %569 = vst.msk [vmem:[%s971_s7 + $0x58] sm:$0xff] %vm557_vm1, %v552_v60  ;;  %v517_v61 = vpop.xlane.xlu0 %516 }
 0x27e   :  { %v549_v62 = vadd.f32 %v540_v41, %v517_v61  ;;  %v520_v63 = vpop.xlane.xlu1 %519 }
 0x27f   :  { %v550_v0 = vadd.f32 %v540_v41, %v520_v63 }
 0x280   :  { %566 = vst.msk [vmem:[%s971_s7 + $0x40] sm:$0xff] %vm557_vm1, %v549_v62 }
 0x281   :  { %567 = vst.msk [vmem:[%s971_s7 + $0x48] sm:$0xff] %vm557_vm1, %v550_v0  ;;  %v529_v1 = vpop.xlane.xlu0 %528 }
 0x282   :  { %v553_v2 = vadd.f32 %v540_v41, %v529_v1 }
 0x283   :  { %v532_v3 = vpop.xlane.xlu1 %531 }
 0x284   :  { %570 = vst.msk [vmem:[%s971_s7 + $0x60] sm:$0xff] %vm557_vm1, %v553_v2  ;;  %v554_v4 = vadd.f32 %v540_v41, %v532_v3 }
 0x285   :  { %v535_v5 = vpop.xlane.xlu0 %534 }
 0x286   :  { %571 = vst.msk [vmem:[%s971_s7 + $0x68] sm:$0xff] %vm557_vm1, %v554_v4  ;;  %v555_v6 = vadd.f32 %v540_v41, %v535_v5 }
 0x287   :  { %v538_v7 = vpop.xlane.xlu1 %537 }
 0x288   :  { %572 = vst.msk [vmem:[%s971_s7 + $0x70] sm:$0xff] %vm557_vm1, %v555_v6  ;;  %v556_v8 = vadd.f32 %v540_v41, %v538_v7 }
 0x28a   :  { %573 = vst.msk [vmem:[%s971_s7 + $0x78] sm:$0xff] %vm557_vm1, %v556_v8 }

</bundles_post_ra>
